<compile_context>
chip_gen: v7x
topology: tpu7x:2x2x1
jax: 0.10.0
libtpu: 0.0.40
codegen_flags: <defaults>
</compile_context>

<pallas_src>
import math
from functools import partial

import numpy as np
import jax
import jax.numpy as jnp
from jax.experimental import pallas as pl
from jax.experimental.pallas import tpu as pltpu

# ----- module constants (hard-coded by the PyTorch module) -------------------
F_CH = 40          # both shallownet convs output 40 channels
K_TIME = 25        # temporal kernel of the first conv
POOL_WIN = 75      # AvgPool2d window (time)
POOL_STRIDE = 15   # AvgPool2d stride (time)
BN_EPS = 1e-5


def _round_up(v, m):
    return (v + m - 1) // m * m


# ----------------------------------------------------------------------------
# Pallas kernel — one batch sample per grid step
# ----------------------------------------------------------------------------
def _patch_embed_kernel(x_ref, wc_ref, bc_ref, pool_ref, wp_ref, bp_ref,
                        out_ref, slab_ref, *, chans_pad, t1_pad):
    """x_ref:(1,C_pad,T_pad) bf16   wc_ref:(40,25*C_pad) bf16   bc_ref:(40,1) f32
    pool_ref:(T1_pad,T2) f32   wp_ref:(40,emb_pad) f32   bp_ref:(1,emb_pad) f32
    out_ref:(1,T2,emb_pad) f32   slab_ref:(25*C_pad,T1_pad) bf16 VMEM scratch."""

    # --- im2col slab: slab[k*C_pad + c, t] = x[c, t + k] -------------------------
    # 25 static shifted Ref -> VMEM-scratch copies (no concat chains, no value
    # relayout pile-up; K_TIME=25 is a small, bounded static loop).
    for k in range(K_TIME):
        slab_ref[k * chans_pad:(k + 1) * chans_pad, :] = x_ref[0, :, k:k + t1_pad]

    # --- Conv2d(1,40,(1,25)) ∘ Conv2d(40,40,(C,1)) ∘ BatchNorm2d(eval) ------------
    # ONE bf16 MXU matmul, K = 25*C_pad, f32 accumulation.
    z = jnp.dot(wc_ref[...], slab_ref[...],
                preferred_element_type=jnp.float32)              # (40, T1_pad)
    z = z + bc_ref[...]                                          # folded conv+BN bias

    # --- ELU (kept in f32; exp goes to the EUP) -----------------------------------
    z = jnp.where(z > 0.0, z, jnp.exp(z) - 1.0)

    # --- AvgPool2d((1,75),(1,15)): one standard (M,K)@(K,N) matmul ----------------
    # Pool matrix has zero rows over the time padding, so padded positions vanish.
    pooled = jnp.dot(z, pool_ref[...],
                     preferred_element_type=jnp.float32)         # (40, T2)

    # TODO(synk): Dropout(0.5) is the identity in eval mode; training-mode dropout and
    # batch-statistics BatchNorm are not modelled.

    # --- 1x1 projection + (permute/reshape): contract the 40-channel axis of both
    # operands; only the tiny (40,T2) LHS is relayouted, never the big activations,
    # and the final store is a lane-dense (T2, emb_pad=128k) slab. -----------------
    out = jax.lax.dot_general(pooled, wp_ref[...],
                              (((0,), (0,)), ((), ())),
                              preferred_element_type=jnp.float32)  # (T2, emb_pad)
    out_ref[0] = out + bp_ref[...]


# ----------------------------------------------------------------------------
# wrapper: weight folding, padding, pooling matrix, pallas_call
# ----------------------------------------------------------------------------
def _fold_shallownet(params, c_pad):
    """Fold Conv2d(1,40,(1,25)) -> Conv2d(40,40,(C,1)) -> BatchNorm2d(eval) into one
    (40, 25*C_pad) bf16 weight (column index = k*C_pad + c, zero over the channel pad)
    plus a (40,1) f32 bias."""
    w1 = params["w1"][:, 0, 0, :]                         # (40, 25)
    w2 = params["w2"][:, :, :, 0]                         # (40, 40, C)
    wf = jnp.einsum("fgc,gk->fkc", w2, w1)                # (40, 25, C)
    bf = jnp.einsum("fgc,g->f", w2, params["b1"]) + params["b2"]
    scale = params["bn_g"] * jax.lax.rsqrt(params["bn_v"] + BN_EPS)
    wf = wf * scale[:, None, None]
    bf = (bf - params["bn_m"]) * scale + params["bn_b"]
    f, k, c = wf.shape
    wc = jnp.pad(wf, ((0, 0), (0, 0), (0, c_pad - c)))     # (40, 25, C_pad)
    wc = wc.reshape(f, k * c_pad).astype(jnp.bfloat16)
    return wc, bf[:, None].astype(jnp.float32)


def _pool_matrix(t1, t1_pad, t2):
    """(T1_pad, T2) average-pool matrix, window 75, stride 15, VALID; zero rows on pad."""
    t = np.arange(t1_pad)[:, None]
    j = np.arange(t2)[None, :]
    a = ((t >= POOL_STRIDE * j) & (t < POOL_STRIDE * j + POOL_WIN) & (t < t1))
    return jnp.asarray(a.astype(np.float32) / float(POOL_WIN))


def patch_embedding_forward(x, params, *, emb):
    bs, one, chans, t = x.shape
    assert one == 1
    t1 = t - (K_TIME - 1)                                  # after the (1,25) conv
    t2 = (t1 - POOL_WIN) // POOL_STRIDE + 1                # after AvgPool
    assert t2 >= 1, "time dimension too short for kernel 25 + pool 75"

    # tile-friendly padding: channels -> x16 (bf16 sublane pack), time -> x128 lanes,
    # emb -> x128 lanes (lane-dense output store; pad sliced off below).
    c_pad = _round_up(chans, 16)
    t1_pad = _round_up(t1, 128)
    t_pad = _round_up(t1_pad + K_TIME - 1, 128)
    emb_pad = _round_up(emb, 128)
    kc = K_TIME * c_pad

    wc, bc = _fold_shallownet(params, c_pad)               # (40, 25*C_pad) bf16, (40,1) f32
    wp = jnp.pad(params["wp"][:, :, 0, 0].T, ((0, 0), (0, emb_pad - emb)))   # (40, emb_pad)
    bp = jnp.pad(params["bp"], (0, emb_pad - emb))[None, :]                  # (1, emb_pad)
    pool = _pool_matrix(t1, t1_pad, t2)                    # (T1_pad, T2) f32

    # (B, C_pad, T_pad) bf16, zero padded
    x2 = jnp.pad(x[:, 0].astype(jnp.bfloat16),
                 ((0, 0), (0, c_pad - chans), (0, t_pad - t)))

    kernel = partial(_patch_embed_kernel, chans_pad=c_pad, t1_pad=t1_pad)

    out = pl.pallas_call(
        kernel,
        grid=(bs,),                                        # one sample per step, parallel
        in_specs=[
            pl.BlockSpec((1, c_pad, t_pad), lambda b: (b, 0, 0)),
            pl.BlockSpec((F_CH, kc), lambda b: (0, 0)),
            pl.BlockSpec((F_CH, 1), lambda b: (0, 0)),
            pl.BlockSpec((t1_pad, t2), lambda b: (0, 0)),
            pl.BlockSpec((F_CH, emb_pad), lambda b: (0, 0)),
            pl.BlockSpec((1, emb_pad), lambda b: (0, 0)),
        ],
        out_specs=pl.BlockSpec((1, t2, emb_pad), lambda b: (b, 0, 0)),
        out_shape=jax.ShapeDtypeStruct((bs, t2, emb_pad), jnp.float32),
        scratch_shapes=[pltpu.VMEM((kc, t1_pad), jnp.bfloat16)],   # im2col slab
        compiler_params=pltpu.CompilerParams(
            dimension_semantics=("parallel",),
            vmem_limit_bytes=32 * 1024 * 1024,             # explicit; fits v5e/v6e/v7x
        ),
    )(x2, wc, bc, pool, wp, bp)

    return out[:, :, :emb]                                 # (B, T2, emb) == permute+reshape


# ----------------------------------------------------------------------------
# deterministic parameter init (mirrors the PyTorch layer shapes / fan-in init)
# ----------------------------------------------------------------------------
def init_params(key, *, channel, emb):
    def lin(k, shape, fan_in):
        bound = 1.0 / math.sqrt(fan_in)
        return jax.random.uniform(k, shape, jnp.float32, -bound, bound)

    ks = jax.random.split(key, 8)
    p = {}
    p["w1"] = lin(ks[0], (F_CH, 1, 1, K_TIME), K_TIME)              # Conv2d(1,40,(1,25))
    p["b1"] = lin(ks[1], (F_CH,), K_TIME)
    p["w2"] = lin(ks[2], (F_CH, F_CH, channel, 1), F_CH * channel)  # Conv2d(40,40,(C,1))
    p["b2"] = lin(ks[3], (F_CH,), F_CH * channel)
    p["bn_g"] = jnp.ones((F_CH,), jnp.float32)                      # BatchNorm2d(40), eval
    p["bn_b"] = jnp.zeros((F_CH,), jnp.float32)
    p["bn_m"] = 0.1 * jax.random.normal(ks[4], (F_CH,), jnp.float32)
    p["bn_v"] = jax.random.uniform(ks[5], (F_CH,), jnp.float32, 0.5, 1.5)
    p["wp"] = lin(ks[6], (emb, F_CH, 1, 1), F_CH)                   # Conv2d(40, emb, (1,1))
    p["bp"] = lin(ks[7], (emb,), F_CH)
    return p


# ----------------------------------------------------------------------------
# pure-JAX reference (un-fused, mirrors the PyTorch ops) for a correctness check
# ----------------------------------------------------------------------------
def reference_forward(x, params, *, emb):
    dn = ("NCHW", "OIHW", "NCHW")
    hp = jax.lax.Precision.HIGHEST
    y = jax.lax.conv_general_dilated(x, params["w1"], (1, 1), "VALID",
                                     dimension_numbers=dn, precision=hp)
    y = y + params["b1"][None, :, None, None]
    y = jax.lax.conv_general_dilated(y, params["w2"], (1, 1), "VALID",
                                     dimension_numbers=dn, precision=hp)
    y = y + params["b2"][None, :, None, None]
    scale = params["bn_g"] / jnp.sqrt(params["bn_v"] + BN_EPS)
    y = (y - params["bn_m"][None, :, None, None]) * scale[None, :, None, None] \
        + params["bn_b"][None, :, None, None]
    y = jnp.where(y > 0.0, y, jnp.exp(y) - 1.0)                     # ELU
    y = jax.lax.reduce_window(y, 0.0, jax.lax.add,
                              (1, 1, 1, POOL_WIN), (1, 1, 1, POOL_STRIDE),
                              "VALID") / float(POOL_WIN)            # AvgPool2d
    # Dropout(0.5): identity in eval mode
    y = jax.lax.conv_general_dilated(y, params["wp"], (1, 1), "VALID",
                                     dimension_numbers=dn, precision=hp)
    y = y + params["bp"][None, :, None, None]
    bs = x.shape[0]
    return jnp.transpose(y, (0, 2, 3, 1)).reshape(bs, -1, emb)


if __name__ == "__main__":
    key = jax.random.PRNGKey(0)
    k_x, k_p = jax.random.split(key)

    BATCH, CHAN, TIME, EMB = 2, 8, 144, 32   # small but valid: T1=120, T2=4
    x = jax.random.normal(k_x, (BATCH, 1, CHAN, TIME), jnp.float32)
    params = init_params(k_p, channel=CHAN, emb=EMB)

    out = jax.block_until_ready(patch_embedding_forward(x, params, emb=EMB))
    T2 = ((TIME - (K_TIME - 1)) - POOL_WIN) // POOL_STRIDE + 1
    assert out.shape == (BATCH, T2, EMB), out.shape

    ref = jax.block_until_ready(reference_forward(x, params, emb=EMB))
    max_err = float(jnp.max(jnp.abs(out - ref)))
    assert bool(jnp.allclose(out, ref, atol=2e-2, rtol=2e-2)), max_err

    print("KERNEL_OK")
</pallas_src>

<mosaic_0001>
module attributes {stable_mosaic.version = 11 : i64} {
  func.func @_patch_embed_kernel(%arg0: i32, %arg1: memref<1x16x256xbf16, #tpu.memory_space<vmem>>, %arg2: memref<40x400xbf16, #tpu.memory_space<vmem>>, %arg3: memref<40x1xf32, #tpu.memory_space<vmem>>, %arg4: memref<128x4xf32, #tpu.memory_space<vmem>>, %arg5: memref<40x128xf32, #tpu.memory_space<vmem>>, %arg6: memref<1x128xf32, #tpu.memory_space<vmem>>, %arg7: memref<1x4x128xf32, #tpu.memory_space<vmem>>, %arg8: memref<400x128xbf16, #tpu.memory_space<vmem>>) attributes {dimension_semantics = [#tpu.dimension_semantics<parallel>], iteration_bounds = array<i64: 2>, scalar_prefetch = 0 : i64, scratch_operands = 1 : i64, tpu.core_type = #tpu.core_type<tc>, window_params = [{transform_indices = @transform_0, window_bounds = array<i64: 1, 16, 256>}, {pipeline_mode = #tpu.pipeline_mode<synchronous>, transform_indices = @transform_1, window_bounds = array<i64: 40, 400>}, {pipeline_mode = #tpu.pipeline_mode<synchronous>, transform_indices = @transform_2, window_bounds = array<i64: 40, 1>}, {pipeline_mode = #tpu.pipeline_mode<synchronous>, transform_indices = @transform_3, window_bounds = array<i64: 128, 4>}, {pipeline_mode = #tpu.pipeline_mode<synchronous>, transform_indices = @transform_4, window_bounds = array<i64: 40, 128>}, {pipeline_mode = #tpu.pipeline_mode<synchronous>, transform_indices = @transform_5, window_bounds = array<i64: 1, 128>}, {transform_indices = @transform_6, window_bounds = array<i64: 1, 4, 128>}]} {
    %c0 = arith.constant 0 : index
    %c0_0 = arith.constant 0 : index
    %c0_1 = arith.constant 0 : index
    %0 = vector.load %arg1[%c0, %c0_0, %c0_1] : memref<1x16x256xbf16, #tpu.memory_space<vmem>>, vector<1x16x128xbf16>
    %1 = vector.shape_cast %0 : vector<1x16x128xbf16> to vector<16x128xbf16>
    %c0_2 = arith.constant 0 : index
    %c0_3 = arith.constant 0 : index
    %2 = vector.load %arg8[%c0_2, %c0_3] : memref<400x128xbf16, #tpu.memory_space<vmem>>, vector<16x128xbf16>
    tpu.vector_store %arg8[%c0_2, %c0_3], %1 {strides = array<i32>} : memref<400x128xbf16, #tpu.memory_space<vmem>>, vector<16x128xbf16>,
    %c0_4 = arith.constant 0 : index
    %c0_5 = arith.constant 0 : index
    %c1 = arith.constant 1 : index
    %3 = vector.load %arg1[%c0_4, %c0_5, %c1] : memref<1x16x256xbf16, #tpu.memory_space<vmem>>, vector<1x16x128xbf16>
    %4 = vector.shape_cast %3 : vector<1x16x128xbf16> to vector<16x128xbf16>
    %c16 = arith.constant 16 : index
    %c0_6 = arith.constant 0 : index
    %5 = vector.load %arg8[%c16, %c0_6] : memref<400x128xbf16, #tpu.memory_space<vmem>>, vector<16x128xbf16>
    tpu.vector_store %arg8[%c16, %c0_6], %4 {strides = array<i32>} : memref<400x128xbf16, #tpu.memory_space<vmem>>, vector<16x128xbf16>,
    %c0_7 = arith.constant 0 : index
    %c0_8 = arith.constant 0 : index
    %c2 = arith.constant 2 : index
    %6 = vector.load %arg1[%c0_7, %c0_8, %c2] : memref<1x16x256xbf16, #tpu.memory_space<vmem>>, vector<1x16x128xbf16>
    %7 = vector.shape_cast %6 : vector<1x16x128xbf16> to vector<16x128xbf16>
    %c32 = arith.constant 32 : index
    %c0_9 = arith.constant 0 : index
    %8 = vector.load %arg8[%c32, %c0_9] : memref<400x128xbf16, #tpu.memory_space<vmem>>, vector<16x128xbf16>
    tpu.vector_store %arg8[%c32, %c0_9], %7 {strides = array<i32>} : memref<400x128xbf16, #tpu.memory_space<vmem>>, vector<16x128xbf16>,
    %c0_10 = arith.constant 0 : index
    %c0_11 = arith.constant 0 : index
    %c3 = arith.constant 3 : index
    %9 = vector.load %arg1[%c0_10, %c0_11, %c3] : memref<1x16x256xbf16, #tpu.memory_space<vmem>>, vector<1x16x128xbf16>
    %10 = vector.shape_cast %9 : vector<1x16x128xbf16> to vector<16x128xbf16>
    %c48 = arith.constant 48 : index
    %c0_12 = arith.constant 0 : index
    %11 = vector.load %arg8[%c48, %c0_12] : memref<400x128xbf16, #tpu.memory_space<vmem>>, vector<16x128xbf16>
    tpu.vector_store %arg8[%c48, %c0_12], %10 {strides = array<i32>} : memref<400x128xbf16, #tpu.memory_space<vmem>>, vector<16x128xbf16>,
    %c0_13 = arith.constant 0 : index
    %c0_14 = arith.constant 0 : index
    %c4 = arith.constant 4 : index
    %12 = vector.load %arg1[%c0_13, %c0_14, %c4] : memref<1x16x256xbf16, #tpu.memory_space<vmem>>, vector<1x16x128xbf16>
    %13 = vector.shape_cast %12 : vector<1x16x128xbf16> to vector<16x128xbf16>
    %c64 = arith.constant 64 : index
    %c0_15 = arith.constant 0 : index
    %14 = vector.load %arg8[%c64, %c0_15] : memref<400x128xbf16, #tpu.memory_space<vmem>>, vector<16x128xbf16>
    tpu.vector_store %arg8[%c64, %c0_15], %13 {strides = array<i32>} : memref<400x128xbf16, #tpu.memory_space<vmem>>, vector<16x128xbf16>,
    %c0_16 = arith.constant 0 : index
    %c0_17 = arith.constant 0 : index
    %c5 = arith.constant 5 : index
    %15 = vector.load %arg1[%c0_16, %c0_17, %c5] : memref<1x16x256xbf16, #tpu.memory_space<vmem>>, vector<1x16x128xbf16>
    %16 = vector.shape_cast %15 : vector<1x16x128xbf16> to vector<16x128xbf16>
    %c80 = arith.constant 80 : index
    %c0_18 = arith.constant 0 : index
    %17 = vector.load %arg8[%c80, %c0_18] : memref<400x128xbf16, #tpu.memory_space<vmem>>, vector<16x128xbf16>
    tpu.vector_store %arg8[%c80, %c0_18], %16 {strides = array<i32>} : memref<400x128xbf16, #tpu.memory_space<vmem>>, vector<16x128xbf16>,
    %c0_19 = arith.constant 0 : index
    %c0_20 = arith.constant 0 : index
    %c6 = arith.constant 6 : index
    %18 = vector.load %arg1[%c0_19, %c0_20, %c6] : memref<1x16x256xbf16, #tpu.memory_space<vmem>>, vector<1x16x128xbf16>
    %19 = vector.shape_cast %18 : vector<1x16x128xbf16> to vector<16x128xbf16>
    %c96 = arith.constant 96 : index
    %c0_21 = arith.constant 0 : index
    %20 = vector.load %arg8[%c96, %c0_21] : memref<400x128xbf16, #tpu.memory_space<vmem>>, vector<16x128xbf16>
    tpu.vector_store %arg8[%c96, %c0_21], %19 {strides = array<i32>} : memref<400x128xbf16, #tpu.memory_space<vmem>>, vector<16x128xbf16>,
    %c0_22 = arith.constant 0 : index
    %c0_23 = arith.constant 0 : index
    %c7 = arith.constant 7 : index
    %21 = vector.load %arg1[%c0_22, %c0_23, %c7] : memref<1x16x256xbf16, #tpu.memory_space<vmem>>, vector<1x16x128xbf16>
    %22 = vector.shape_cast %21 : vector<1x16x128xbf16> to vector<16x128xbf16>
    %c112 = arith.constant 112 : index
    %c0_24 = arith.constant 0 : index
    %23 = vector.load %arg8[%c112, %c0_24] : memref<400x128xbf16, #tpu.memory_space<vmem>>, vector<16x128xbf16>
    tpu.vector_store %arg8[%c112, %c0_24], %22 {strides = array<i32>} : memref<400x128xbf16, #tpu.memory_space<vmem>>, vector<16x128xbf16>,
    %c0_25 = arith.constant 0 : index
    %c0_26 = arith.constant 0 : index
    %c8 = arith.constant 8 : index
    %24 = vector.load %arg1[%c0_25, %c0_26, %c8] : memref<1x16x256xbf16, #tpu.memory_space<vmem>>, vector<1x16x128xbf16>
    %25 = vector.shape_cast %24 : vector<1x16x128xbf16> to vector<16x128xbf16>
    %c128 = arith.constant 128 : index
    %c0_27 = arith.constant 0 : index
    %26 = vector.load %arg8[%c128, %c0_27] : memref<400x128xbf16, #tpu.memory_space<vmem>>, vector<16x128xbf16>
    tpu.vector_store %arg8[%c128, %c0_27], %25 {strides = array<i32>} : memref<400x128xbf16, #tpu.memory_space<vmem>>, vector<16x128xbf16>,
    %c0_28 = arith.constant 0 : index
    %c0_29 = arith.constant 0 : index
    %c9 = arith.constant 9 : index
    %27 = vector.load %arg1[%c0_28, %c0_29, %c9] : memref<1x16x256xbf16, #tpu.memory_space<vmem>>, vector<1x16x128xbf16>
    %28 = vector.shape_cast %27 : vector<1x16x128xbf16> to vector<16x128xbf16>
    %c144 = arith.constant 144 : index
    %c0_30 = arith.constant 0 : index
    %29 = vector.load %arg8[%c144, %c0_30] : memref<400x128xbf16, #tpu.memory_space<vmem>>, vector<16x128xbf16>
    tpu.vector_store %arg8[%c144, %c0_30], %28 {strides = array<i32>} : memref<400x128xbf16, #tpu.memory_space<vmem>>, vector<16x128xbf16>,
    %c0_31 = arith.constant 0 : index
    %c0_32 = arith.constant 0 : index
    %c10 = arith.constant 10 : index
    %30 = vector.load %arg1[%c0_31, %c0_32, %c10] : memref<1x16x256xbf16, #tpu.memory_space<vmem>>, vector<1x16x128xbf16>
    %31 = vector.shape_cast %30 : vector<1x16x128xbf16> to vector<16x128xbf16>
    %c160 = arith.constant 160 : index
    %c0_33 = arith.constant 0 : index
    %32 = vector.load %arg8[%c160, %c0_33] : memref<400x128xbf16, #tpu.memory_space<vmem>>, vector<16x128xbf16>
    tpu.vector_store %arg8[%c160, %c0_33], %31 {strides = array<i32>} : memref<400x128xbf16, #tpu.memory_space<vmem>>, vector<16x128xbf16>,
    %c0_34 = arith.constant 0 : index
    %c0_35 = arith.constant 0 : index
    %c11 = arith.constant 11 : index
    %33 = vector.load %arg1[%c0_34, %c0_35, %c11] : memref<1x16x256xbf16, #tpu.memory_space<vmem>>, vector<1x16x128xbf16>
    %34 = vector.shape_cast %33 : vector<1x16x128xbf16> to vector<16x128xbf16>
    %c176 = arith.constant 176 : index
    %c0_36 = arith.constant 0 : index
    %35 = vector.load %arg8[%c176, %c0_36] : memref<400x128xbf16, #tpu.memory_space<vmem>>, vector<16x128xbf16>
    tpu.vector_store %arg8[%c176, %c0_36], %34 {strides = array<i32>} : memref<400x128xbf16, #tpu.memory_space<vmem>>, vector<16x128xbf16>,
    %c0_37 = arith.constant 0 : index
    %c0_38 = arith.constant 0 : index
    %c12 = arith.constant 12 : index
    %36 = vector.load %arg1[%c0_37, %c0_38, %c12] : memref<1x16x256xbf16, #tpu.memory_space<vmem>>, vector<1x16x128xbf16>
    %37 = vector.shape_cast %36 : vector<1x16x128xbf16> to vector<16x128xbf16>
    %c192 = arith.constant 192 : index
    %c0_39 = arith.constant 0 : index
    %38 = vector.load %arg8[%c192, %c0_39] : memref<400x128xbf16, #tpu.memory_space<vmem>>, vector<16x128xbf16>
    tpu.vector_store %arg8[%c192, %c0_39], %37 {strides = array<i32>} : memref<400x128xbf16, #tpu.memory_space<vmem>>, vector<16x128xbf16>,
    %c0_40 = arith.constant 0 : index
    %c0_41 = arith.constant 0 : index
    %c13 = arith.constant 13 : index
    %39 = vector.load %arg1[%c0_40, %c0_41, %c13] : memref<1x16x256xbf16, #tpu.memory_space<vmem>>, vector<1x16x128xbf16>
    %40 = vector.shape_cast %39 : vector<1x16x128xbf16> to vector<16x128xbf16>
    %c208 = arith.constant 208 : index
    %c0_42 = arith.constant 0 : index
    %41 = vector.load %arg8[%c208, %c0_42] : memref<400x128xbf16, #tpu.memory_space<vmem>>, vector<16x128xbf16>
    tpu.vector_store %arg8[%c208, %c0_42], %40 {strides = array<i32>} : memref<400x128xbf16, #tpu.memory_space<vmem>>, vector<16x128xbf16>,
    %c0_43 = arith.constant 0 : index
    %c0_44 = arith.constant 0 : index
    %c14 = arith.constant 14 : index
    %42 = vector.load %arg1[%c0_43, %c0_44, %c14] : memref<1x16x256xbf16, #tpu.memory_space<vmem>>, vector<1x16x128xbf16>
    %43 = vector.shape_cast %42 : vector<1x16x128xbf16> to vector<16x128xbf16>
    %c224 = arith.constant 224 : index
    %c0_45 = arith.constant 0 : index
    %44 = vector.load %arg8[%c224, %c0_45] : memref<400x128xbf16, #tpu.memory_space<vmem>>, vector<16x128xbf16>
    tpu.vector_store %arg8[%c224, %c0_45], %43 {strides = array<i32>} : memref<400x128xbf16, #tpu.memory_space<vmem>>, vector<16x128xbf16>,
    %c0_46 = arith.constant 0 : index
    %c0_47 = arith.constant 0 : index
    %c15 = arith.constant 15 : index
    %45 = vector.load %arg1[%c0_46, %c0_47, %c15] : memref<1x16x256xbf16, #tpu.memory_space<vmem>>, vector<1x16x128xbf16>
    %46 = vector.shape_cast %45 : vector<1x16x128xbf16> to vector<16x128xbf16>
    %c240 = arith.constant 240 : index
    %c0_48 = arith.constant 0 : index
    %47 = vector.load %arg8[%c240, %c0_48] : memref<400x128xbf16, #tpu.memory_space<vmem>>, vector<16x128xbf16>
    tpu.vector_store %arg8[%c240, %c0_48], %46 {strides = array<i32>} : memref<400x128xbf16, #tpu.memory_space<vmem>>, vector<16x128xbf16>,
    %c0_49 = arith.constant 0 : index
    %c0_50 = arith.constant 0 : index
    %c16_51 = arith.constant 16 : index
    %48 = vector.load %arg1[%c0_49, %c0_50, %c16_51] : memref<1x16x256xbf16, #tpu.memory_space<vmem>>, vector<1x16x128xbf16>
    %49 = vector.shape_cast %48 : vector<1x16x128xbf16> to vector<16x128xbf16>
    %c256 = arith.constant 256 : index
    %c0_52 = arith.constant 0 : index
    %50 = vector.load %arg8[%c256, %c0_52] : memref<400x128xbf16, #tpu.memory_space<vmem>>, vector<16x128xbf16>
    tpu.vector_store %arg8[%c256, %c0_52], %49 {strides = array<i32>} : memref<400x128xbf16, #tpu.memory_space<vmem>>, vector<16x128xbf16>,
    %c0_53 = arith.constant 0 : index
    %c0_54 = arith.constant 0 : index
    %c17 = arith.constant 17 : index
    %51 = vector.load %arg1[%c0_53, %c0_54, %c17] : memref<1x16x256xbf16, #tpu.memory_space<vmem>>, vector<1x16x128xbf16>
    %52 = vector.shape_cast %51 : vector<1x16x128xbf16> to vector<16x128xbf16>
    %c272 = arith.constant 272 : index
    %c0_55 = arith.constant 0 : index
    %53 = vector.load %arg8[%c272, %c0_55] : memref<400x128xbf16, #tpu.memory_space<vmem>>, vector<16x128xbf16>
    tpu.vector_store %arg8[%c272, %c0_55], %52 {strides = array<i32>} : memref<400x128xbf16, #tpu.memory_space<vmem>>, vector<16x128xbf16>,
    %c0_56 = arith.constant 0 : index
    %c0_57 = arith.constant 0 : index
    %c18 = arith.constant 18 : index
    %54 = vector.load %arg1[%c0_56, %c0_57, %c18] : memref<1x16x256xbf16, #tpu.memory_space<vmem>>, vector<1x16x128xbf16>
    %55 = vector.shape_cast %54 : vector<1x16x128xbf16> to vector<16x128xbf16>
    %c288 = arith.constant 288 : index
    %c0_58 = arith.constant 0 : index
    %56 = vector.load %arg8[%c288, %c0_58] : memref<400x128xbf16, #tpu.memory_space<vmem>>, vector<16x128xbf16>
    tpu.vector_store %arg8[%c288, %c0_58], %55 {strides = array<i32>} : memref<400x128xbf16, #tpu.memory_space<vmem>>, vector<16x128xbf16>,
    %c0_59 = arith.constant 0 : index
    %c0_60 = arith.constant 0 : index
    %c19 = arith.constant 19 : index
    %57 = vector.load %arg1[%c0_59, %c0_60, %c19] : memref<1x16x256xbf16, #tpu.memory_space<vmem>>, vector<1x16x128xbf16>
    %58 = vector.shape_cast %57 : vector<1x16x128xbf16> to vector<16x128xbf16>
    %c304 = arith.constant 304 : index
    %c0_61 = arith.constant 0 : index
    %59 = vector.load %arg8[%c304, %c0_61] : memref<400x128xbf16, #tpu.memory_space<vmem>>, vector<16x128xbf16>
    tpu.vector_store %arg8[%c304, %c0_61], %58 {strides = array<i32>} : memref<400x128xbf16, #tpu.memory_space<vmem>>, vector<16x128xbf16>,
    %c0_62 = arith.constant 0 : index
    %c0_63 = arith.constant 0 : index
    %c20 = arith.constant 20 : index
    %60 = vector.load %arg1[%c0_62, %c0_63, %c20] : memref<1x16x256xbf16, #tpu.memory_space<vmem>>, vector<1x16x128xbf16>
    %61 = vector.shape_cast %60 : vector<1x16x128xbf16> to vector<16x128xbf16>
    %c320 = arith.constant 320 : index
    %c0_64 = arith.constant 0 : index
    %62 = vector.load %arg8[%c320, %c0_64] : memref<400x128xbf16, #tpu.memory_space<vmem>>, vector<16x128xbf16>
    tpu.vector_store %arg8[%c320, %c0_64], %61 {strides = array<i32>} : memref<400x128xbf16, #tpu.memory_space<vmem>>, vector<16x128xbf16>,
    %c0_65 = arith.constant 0 : index
    %c0_66 = arith.constant 0 : index
    %c21 = arith.constant 21 : index
    %63 = vector.load %arg1[%c0_65, %c0_66, %c21] : memref<1x16x256xbf16, #tpu.memory_space<vmem>>, vector<1x16x128xbf16>
    %64 = vector.shape_cast %63 : vector<1x16x128xbf16> to vector<16x128xbf16>
    %c336 = arith.constant 336 : index
    %c0_67 = arith.constant 0 : index
    %65 = vector.load %arg8[%c336, %c0_67] : memref<400x128xbf16, #tpu.memory_space<vmem>>, vector<16x128xbf16>
    tpu.vector_store %arg8[%c336, %c0_67], %64 {strides = array<i32>} : memref<400x128xbf16, #tpu.memory_space<vmem>>, vector<16x128xbf16>,
    %c0_68 = arith.constant 0 : index
    %c0_69 = arith.constant 0 : index
    %c22 = arith.constant 22 : index
    %66 = vector.load %arg1[%c0_68, %c0_69, %c22] : memref<1x16x256xbf16, #tpu.memory_space<vmem>>, vector<1x16x128xbf16>
    %67 = vector.shape_cast %66 : vector<1x16x128xbf16> to vector<16x128xbf16>
    %c352 = arith.constant 352 : index
    %c0_70 = arith.constant 0 : index
    %68 = vector.load %arg8[%c352, %c0_70] : memref<400x128xbf16, #tpu.memory_space<vmem>>, vector<16x128xbf16>
    tpu.vector_store %arg8[%c352, %c0_70], %67 {strides = array<i32>} : memref<400x128xbf16, #tpu.memory_space<vmem>>, vector<16x128xbf16>,
    %c0_71 = arith.constant 0 : index
    %c0_72 = arith.constant 0 : index
    %c23 = arith.constant 23 : index
    %69 = vector.load %arg1[%c0_71, %c0_72, %c23] : memref<1x16x256xbf16, #tpu.memory_space<vmem>>, vector<1x16x128xbf16>
    %70 = vector.shape_cast %69 : vector<1x16x128xbf16> to vector<16x128xbf16>
    %c368 = arith.constant 368 : index
    %c0_73 = arith.constant 0 : index
    %71 = vector.load %arg8[%c368, %c0_73] : memref<400x128xbf16, #tpu.memory_space<vmem>>, vector<16x128xbf16>
    tpu.vector_store %arg8[%c368, %c0_73], %70 {strides = array<i32>} : memref<400x128xbf16, #tpu.memory_space<vmem>>, vector<16x128xbf16>,
    %c0_74 = arith.constant 0 : index
    %c0_75 = arith.constant 0 : index
    %c24 = arith.constant 24 : index
    %72 = vector.load %arg1[%c0_74, %c0_75, %c24] : memref<1x16x256xbf16, #tpu.memory_space<vmem>>, vector<1x16x128xbf16>
    %73 = vector.shape_cast %72 : vector<1x16x128xbf16> to vector<16x128xbf16>
    %c384 = arith.constant 384 : index
    %c0_76 = arith.constant 0 : index
    %74 = vector.load %arg8[%c384, %c0_76] : memref<400x128xbf16, #tpu.memory_space<vmem>>, vector<16x128xbf16>
    tpu.vector_store %arg8[%c384, %c0_76], %73 {strides = array<i32>} : memref<400x128xbf16, #tpu.memory_space<vmem>>, vector<16x128xbf16>,
    %c0_77 = arith.constant 0 : index
    %c0_78 = arith.constant 0 : index
    %75 = vector.load %arg2[%c0_77, %c0_78] : memref<40x400xbf16, #tpu.memory_space<vmem>>, vector<40x400xbf16>
    %c0_79 = arith.constant 0 : index
    %c0_80 = arith.constant 0 : index
    %76 = vector.load %arg8[%c0_79, %c0_80] : memref<400x128xbf16, #tpu.memory_space<vmem>>, vector<400x128xbf16>
    %cst = arith.constant dense<0.000000e+00> : vector<40x128xf32>
    %77 = tpu.matmul %75, %76, %cst {dimension_numbers = #tpu.dot_dimension_numbers<[1], [0], [0], [1], [0, 0, 1, 1], [], []>} : vector<40x400xbf16>, vector<400x128xbf16>, vector<40x128xf32> -> vector<40x128xf32>
    %c0_81 = arith.constant 0 : index
    %c0_82 = arith.constant 0 : index
    %78 = vector.load %arg3[%c0_81, %c0_82] : memref<40x1xf32, #tpu.memory_space<vmem>>, vector<40x1xf32>
    %79 = vector.broadcast %78 : vector<40x1xf32> to vector<40x128xf32>
    %80 = arith.addf %77, %79 : vector<40x128xf32>
    %cst_83 = arith.constant 0.000000e+00 : f32
    %81 = vector.broadcast %cst_83 : f32 to vector<40x128xf32>
    %82 = arith.cmpf ogt, %80, %81 : vector<40x128xf32>
    %83 = math.exp %80 : vector<40x128xf32>
    %cst_84 = arith.constant 1.000000e+00 : f32
    %84 = vector.broadcast %cst_84 : f32 to vector<40x128xf32>
    %85 = arith.subf %83, %84 : vector<40x128xf32>
    %86 = arith.select %82, %80, %85 : vector<40x128xi1>, vector<40x128xf32>
    %c0_85 = arith.constant 0 : index
    %c0_86 = arith.constant 0 : index
    %87 = vector.load %arg4[%c0_85, %c0_86] : memref<128x4xf32, #tpu.memory_space<vmem>>, vector<128x4xf32>
    %cst_87 = arith.constant dense<0.000000e+00> : vector<40x4xf32>
    %88 = tpu.matmul %86, %87, %cst_87 {dimension_numbers = #tpu.dot_dimension_numbers<[1], [0], [0], [1], [0, 0, 1, 1], [], []>} : vector<40x128xf32>, vector<128x4xf32>, vector<40x4xf32> -> vector<40x4xf32>
    %c0_88 = arith.constant 0 : index
    %c0_89 = arith.constant 0 : index
    %89 = vector.load %arg5[%c0_88, %c0_89] : memref<40x128xf32, #tpu.memory_space<vmem>>, vector<40x128xf32>
    %cst_90 = arith.constant dense<0.000000e+00> : vector<4x128xf32>
    %90 = tpu.matmul %88, %89, %cst_90 {dimension_numbers = #tpu.dot_dimension_numbers<[0], [0], [1], [1], [0, 1, 1, 1], [], []>} : vector<40x4xf32>, vector<40x128xf32>, vector<4x128xf32> -> vector<4x128xf32>
    %c0_91 = arith.constant 0 : index
    %c0_92 = arith.constant 0 : index
    %91 = vector.load %arg6[%c0_91, %c0_92] : memref<1x128xf32, #tpu.memory_space<vmem>>, vector<1x128xf32>
    %92 = vector.broadcast %91 : vector<1x128xf32> to vector<4x128xf32>
    %93 = arith.addf %90, %92 : vector<4x128xf32>
    %c0_93 = arith.constant 0 : index
    %c0_94 = arith.constant 0 : index
    %c0_95 = arith.constant 0 : index
    %94 = vector.load %arg7[%c0_93, %c0_94, %c0_95] : memref<1x4x128xf32, #tpu.memory_space<vmem>>, vector<1x4x128xf32>
    %95 = vector.shape_cast %94 : vector<1x4x128xf32> to vector<4x128xf32>
    %96 = vector.shape_cast %93 : vector<4x128xf32> to vector<1x4x128xf32>
    tpu.vector_store %arg7[%c0_93, %c0_94, %c0_95], %96 {strides = array<i32>} : memref<1x4x128xf32, #tpu.memory_space<vmem>>, vector<1x4x128xf32>,
    return
  }
  func.func @transform_0(%arg0: i32) -> (i32, i32, i32) {
    %c0_i32 = arith.constant 0 : i32
    %c0_i32_0 = arith.constant 0 : i32
    %c0_i32_1 = arith.constant 0 : i32
    return %arg0, %c0_i32, %c0_i32_0 : i32, i32, i32
  }
  func.func @transform_1(%arg0: i32) -> (i32, i32) {
    %c0_i32 = arith.constant 0 : i32
    %c0_i32_0 = arith.constant 0 : i32
    %c0_i32_1 = arith.constant 0 : i32
    return %c0_i32, %c0_i32_0 : i32, i32
  }
  func.func @transform_2(%arg0: i32) -> (i32, i32) {
    %c0_i32 = arith.constant 0 : i32
    %c0_i32_0 = arith.constant 0 : i32
    %c0_i32_1 = arith.constant 0 : i32
    return %c0_i32, %c0_i32_0 : i32, i32
  }
  func.func @transform_3(%arg0: i32) -> (i32, i32) {
    %c0_i32 = arith.constant 0 : i32
    %c0_i32_0 = arith.constant 0 : i32
    %c0_i32_1 = arith.constant 0 : i32
    return %c0_i32, %c0_i32_0 : i32, i32
  }
  func.func @transform_4(%arg0: i32) -> (i32, i32) {
    %c0_i32 = arith.constant 0 : i32
    %c0_i32_0 = arith.constant 0 : i32
    %c0_i32_1 = arith.constant 0 : i32
    return %c0_i32, %c0_i32_0 : i32, i32
  }
  func.func @transform_5(%arg0: i32) -> (i32, i32) {
    %c0_i32 = arith.constant 0 : i32
    %c0_i32_0 = arith.constant 0 : i32
    %c0_i32_1 = arith.constant 0 : i32
    return %c0_i32, %c0_i32_0 : i32, i32
  }
  func.func @transform_6(%arg0: i32) -> (i32, i32, i32) {
    %c0_i32 = arith.constant 0 : i32
    %c0_i32_0 = arith.constant 0 : i32
    %c0_i32_1 = arith.constant 0 : i32
    return %arg0, %c0_i32, %c0_i32_0 : i32, i32, i32
  }
}

</mosaic_0001>

<bundles_post_ra>
// kernel: tpu_custom_call.1
= control target key start
LH: loop header
LB: loop body
LE: loop exit
PB: predicated region body
PF: predicated region fallthrough
CT: control target
= control target key end

     0   :  { %11 = vsyncpa [#allocation4], 0  ;;  %s2019_s0 = inlined_call_operand.vmem [shape: bf16[2,16,256], index: 0, kind: input, shape index: {}]   ;;  %s2020_s1 = inlined_call_operand.vmem [shape: bf16[40,400], index: 1, kind: input, shape index: {}]   ;;  %s2021_s2 = inlined_call_operand.vmem [shape: f32[40,1], index: 2, kind: input, shape index: {}]   ;;  %s2022_s3 = inlined_call_operand.vmem [shape: f32[128,4], index: 3, kind: input, shape index: {}]   ;;  %s2023_s4 = inlined_call_operand.vmem [shape: f32[40,128], index: 4, kind: input, shape index: {}]   ;;  %s2024_s5 = inlined_call_operand.vmem [shape: f32[1,128], index: 5, kind: input, shape index: {}]   ;;  %s2025_s6 = inlined_call_operand.hbm [shape: f32[2,4,128], index: 6, kind: output, shape index: {}]  }
   0x1   :  { %13 = vsyncpa [#allocation4 + $0x1], 0  ;;  %s1714_s21 = smov 0   ;;  %s1716_s22 = smov 0  }
   0x2   :  { %s1718_s23 = smov 0   ;;  %s1720_s24 = smov 0  }
   0x3 LB: > { %s1735_s25 = sadd.s32 4294967295, %s1648_s24   ;;  %s1253_s26 = sadd.s32 4294967294, %s1648_s24   ;;  %s1648_s24 = sphi %s1720_s24, %s2031_s24   ;;  %s1644_s23 = sphi %s1718_s23, %s2030_s23   ;;  %s1640_s22 = sphi %s1716_s22, %s2029_s22   ;;  %s1636_s21 = sphi %s1714_s21, %s2028_s21  }
   0x4   : > { %s1739_s27 = sadd.s32 1, %s1648_s24   ;;  %s157_s28 = sadd.s32 1, %s1644_s23 }
   0x5   : > { %s154_s29 = ssub.s32 %s1648_s24, %s1739_s27  ;;  %p167_p0 = scmp.ne.s32.totalorder %s1644_s23, %s1640_s22 }
   0x6   : > { %p155_p1 = scmp.eq.s32.totalorder %s154_s29, 0  ;;  %p168_p2 = scmp.eq.s32.totalorder %s1735_s25, 1 }
   0x7   : > { %p173_p3 = scmp.ne.s32.totalorder %s1640_s22, %s1636_s21  ;;  %p174_p4 = scmp.eq.s32.totalorder %s1253_s26, 1 }
   0x8   : > { %s1750_s30 = scalar_select %p155_p1, %s1644_s23, %s157_s28  }
   0x9   : > { %p1752_p5 = por %p168_p2, %p167_p0  ;;  %p1756_p6 = por %p174_p4, %p173_p3 }
   0xa   : > { %p1256_p7 = scmp.ge.s32.totalorder %s1648_s24, 1  ;;  %p215_p8 = scmp.lt.s32.totalorder %s1648_s24, 3 }
   0xc   : > { %p216_p9 = pnand %p1256_p7, %p215_p8 }
   0xd   : > { %p245_p10 = scmp.lt.s32.totalorder (!%p216_p9), %s1735_s25, 1  ;;  %v1650_v0 = vmov (!%p216_p9), 0   ;;  %s1651_s14 = smov (!%p216_p9), 112   ;;  %v1562_v3 = vld [vmem:[%s2020_s1 + $0x4] ss:$16 sps:$4 sm:$0xff] (!%p216_p9)   ;;  %vm808_vm0 = vcmask (!%p216_p9), 130048  }
   0xe   : > { %219 = sbr.rel (%p216_p9) target bundleno = 1036 (0x40c), region = 44  ;;  %874 = vmatprep.subr.bf16.mxu1 (!%p216_p9), %v1650_v0  ;;  %1555 = vset.pattern.permute.xlu1 (!%p216_p9), %v1650_v0  ;;  %s1652_s15 = smov (!%p216_p9), 120   ;;  %v1567_v4 = vld [vmem:[%s2020_s1 + $0xc] ss:$16 sps:$4 sm:$0xff] (!%p216_p9)   ;;  %v727_v6 = vld [vmem:[%s2021_s2] sm:$0xff] (!%p216_p9)  ;;  %v729_v7 = vld [vmem:[%s2021_s2 + $0x10] sm:$0xff] (!%p216_p9) }
   0xf   : > { %1554 = vset.pattern.permute.xlu0 (!%p216_p9), %v1650_v0  ;;  %s1653_s16 = smov (!%p216_p9), 119   ;;  %s1654_s17 = smov (!%p216_p9), 127   ;;  %850 = vmatprep.mubr.bf16.mxu0 (!%p216_p9), %v1562_v3  ;;  %v728_v5 = vld [vmem:[%s2021_s2 + $0x8] sm:$0xff] (!%p216_p9)  ;;  %v730_v8 = vld [vmem:[%s2021_s2 + $0x18] sm:$0xff] (!%p216_p9)  ;;  %v731_v9 = vld [vmem:[%s2021_s2 + $0x20] sm:$0xff] (!%p216_p9)  ;;  %vm400_vm1 = vcmask (!%p216_p9), 982016  }
  0x10   : > { %s1655_s18 = smov (!%p216_p9), 111   ;;  %s1656_s19 = smov (!%p216_p9), 118   ;;  %1321 = vmatprep.mubr.msk.bf16.mxu1 (!%p216_p9), %vm808_vm0, %v1567_v4  ;;  %vm544_vm2 = vcmask (!%p216_p9), 916480   ;;  %vm418_vm3 = vcmask (!%p216_p9), 973824   ;;  %vm274_vm4 = vcmask (!%p216_p9), 1039360   ;;  %vm562_vm5 = vcmask (!%p216_p9), 908288  }
  0x11   : > { %s1657_s20 = smov (!%p216_p9), 126   ;;  %s1658_s26 = smov (!%p216_p9), 110   ;;  %vm436_vm6 = vcmask (!%p216_p9), 965632   ;;  %vm292_vm7 = vcmask (!%p216_p9), 1031168   ;;  %vm580_vm8 = vcmask (!%p216_p9), 900096   ;;  %vm454_vm9 = vcmask (!%p216_p9), 957440  }
  0x12   : > { %s1659_s28 = smov (!%p216_p9), 117   ;;  %s1660_s29 = smov (!%p216_p9), 125   ;;  %vm310_vm10 = vcmask (!%p216_p9), 1022976   ;;  %vm598_vm11 = vcmask (!%p216_p9), 891904   ;;  %vm472_vm12 = vcmask (!%p216_p9), 949248   ;;  %vm328_vm13 = vcmask (!%p216_p9), 1014784  }
  0x13   : > { %s1663_s11 = smov (!%p216_p9), 124   ;;  %s1664_s12 = smov (!%p216_p9), 108   ;;  %vm616_vm14 = vcmask (!%p216_p9), 883712   ;;  %vm490_vm15 = vcmask (!%p216_p9), 941056  }
  0x15   : > { %s246_s9 = scalar_select %p245_p10, %s1735_s25, 1 }
  0x17   : > { %s1335_s10 = sshll.u32 %s246_s9, 4  ;;  %s1661_s9 = smov 109  }
  0x18   : > { %s1770_s13 = scalar_lea.vmem %s2019_s0, %s1335_s10  ;;  %s1662_s10 = smov 116  }
  0x19   : > { %v1773_v1 = vld [vmem:[%s1770_s13] ss:$8 sps:$4 sm:$0xff]   ;;  %v1776_v2 = vld [vmem:[%s1770_s13 + $0x4] ss:$8 sps:$4 sm:$0xff]  }
  0x1a   : > { %540 = vrot.lane.b32.xlu1 %v1773_v1, %s1651_s14  ;;  %396 = vrot.lane.b32.xlu0 %v1773_v1, %s1652_s15  ;;  %v1559_v12 = vld [vmem:[%s1770_s13] ss:$8 sps:$4 sm:$0xff]  }
  0x1e   : > { %542 = vrot.lane.b32.xlu1 %v1776_v2, %s1651_s14  ;;  %398 = vrot.lane.b32.xlu0 %v1776_v2, %s1652_s15  ;;  %s1665_s14 = smov 115   ;;  %s1666_s15 = smov 123  }
  0x22   : > { %416 = vrot.lane.b32.xlu1 %v1776_v2, %s1653_s16  ;;  %414 = vrot.lane.b32.xlu0 %v1773_v1, %s1653_s16  ;;  %s1667_s16 = smov 107  }
  0x26   : > { %272 = vrot.lane.b32.xlu1 %v1776_v2, %s1654_s17  ;;  %270 = vrot.lane.b32.xlu0 %v1773_v1, %s1654_s17  ;;  %s1668_s17 = smov 114  }
  0x2a   : > { %560 = vrot.lane.b32.xlu1 %v1776_v2, %s1655_s18  ;;  %558 = vrot.lane.b32.xlu0 %v1773_v1, %s1655_s18  ;;  %s1669_s18 = smov 122  }
  0x2e   : > { %434 = vrot.lane.b32.xlu1 %v1776_v2, %s1656_s19  ;;  %432 = vrot.lane.b32.xlu0 %v1773_v1, %s1656_s19 }
  0x32   : > { %290 = vrot.lane.b32.xlu1 %v1776_v2, %s1657_s20  ;;  %288 = vrot.lane.b32.xlu0 %v1773_v1, %s1657_s20 }
  0x36   : > { %578 = vrot.lane.b32.xlu1 %v1776_v2, %s1658_s26  ;;  %576 = vrot.lane.b32.xlu0 %v1773_v1, %s1658_s26  ;;  %s1670_s26 = smov 106  }
  0x3a   : > { %452 = vrot.lane.b32.xlu1 %v1776_v2, %s1659_s28  ;;  %450 = vrot.lane.b32.xlu0 %v1773_v1, %s1659_s28  ;;  %s1671_s28 = smov 113  }
  0x3e   : > { %308 = vrot.lane.b32.xlu1 %v1776_v2, %s1660_s29  ;;  %306 = vrot.lane.b32.xlu0 %v1773_v1, %s1660_s29 }
  0x42   : > { %596 = vrot.lane.b32.xlu1 %v1776_v2, %s1661_s9  ;;  %594 = vrot.lane.b32.xlu0 %v1773_v1, %s1661_s9 }
  0x46   : > { %470 = vrot.lane.b32.xlu1 %v1776_v2, %s1662_s10  ;;  %468 = vrot.lane.b32.xlu0 %v1773_v1, %s1662_s10  ;;  %s1672_s10 = smov 121  }
  0x4a   : > { %326 = vrot.lane.b32.xlu1 %v1776_v2, %s1663_s11  ;;  %324 = vrot.lane.b32.xlu0 %v1773_v1, %s1663_s11  ;;  %s1673_s11 = smov 105  }
  0x4e   : > { %614 = vrot.lane.b32.xlu1 %v1776_v2, %s1664_s12  ;;  %612 = vrot.lane.b32.xlu0 %v1773_v1, %s1664_s12  ;;  %s1674_s12 = smov 104  }
  0x52   : > { %488 = vrot.lane.b32.xlu1 %v1776_v2, %s1665_s14  ;;  %486 = vrot.lane.b32.xlu0 %v1773_v1, %s1665_s14 }
  0x56   : > { %344 = vrot.lane.b32.xlu1 %v1776_v2, %s1666_s15  ;;  %342 = vrot.lane.b32.xlu0 %v1773_v1, %s1666_s15 }
  0x5a   : > { %632 = vrot.lane.b32.xlu1 %v1776_v2, %s1667_s16  ;;  %630 = vrot.lane.b32.xlu0 %v1773_v1, %s1667_s16 }
  0x5e   : > { %506 = vrot.lane.b32.xlu1 %v1776_v2, %s1668_s17  ;;  %504 = vrot.lane.b32.xlu0 %v1773_v1, %s1668_s17 }
  0x62   : > { %362 = vrot.lane.b32.xlu1 %v1776_v2, %s1669_s18  ;;  %360 = vrot.lane.b32.xlu0 %v1773_v1, %s1669_s18 }
  0x66   : > { %650 = vrot.lane.b32.xlu1 %v1776_v2, %s1670_s26  ;;  %648 = vrot.lane.b32.xlu0 %v1773_v1, %s1670_s26 }
  0x6a   : > { %524 = vrot.lane.b32.xlu1 %v1776_v2, %s1671_s28  ;;  %522 = vrot.lane.b32.xlu0 %v1773_v1, %s1671_s28  ;;  %s242_s28 = sand.u32 1, %s1640_s22  }
  0x6b   : > { %s1257_s29 = sshll.u32 %s242_s28, 2  ;;  %s1181_s17 = scalar_lea.sflag [#allocation4], %s242_s28 }
  0x6e   : > { %380 = vrot.lane.b32.xlu1 %v1776_v2, %s1672_s10  ;;  %378 = vrot.lane.b32.xlu0 %v1773_v1, %s1672_s10  ;;  %s1332_s10 = sshll.u32 %s1735_s25, 6  ;;  %s1678_s25 = smov [#allocation3]  }
  0x6f   : > { %s1977_s16 = scalar_lea.hbm %s2025_s6, %s1332_s10  ;;  %s1590_s19 = sshll.u32 %s1678_s25, 4  ;;  %s1591_s19 = int_to_ptr.vmem [resolvable:$false] %s1590_s19 }
  0x70   : > { %s1592_s20 = scalar_lea.vmem %s1591_s19, 128 }
  0x72   : > { %668 = vrot.lane.b32.xlu1 %v1776_v2, %s1673_s11  ;;  %666 = vrot.lane.b32.xlu0 %v1773_v1, %s1673_s11  ;;  %s244_s11 = scalar_lea.vmem [#allocation3], %s1257_s29 }
  0x76   : > { %686 = vrot.lane.b32.xlu1 %v1776_v2, %s1674_s12  ;;  %684 = vrot.lane.b32.xlu0 %v1773_v1, %s1674_s12  ;;  %s1194_s12 = sshll.u32 %s244_s11, 4  ;;  %s1979_s12 = int_to_ptr.vmem [resolvable:$true] %s1194_s12 }
  0x77   : > { %s1586_s18 = scalar_lea.vmem %s1979_s12, 64  ;;  %p1593_p0 = scmp.lt.s32.totalorder %s1979_s12, %s1591_s19 }
  0x78   : > { %p1587_p11 = scmp.ne.s32.totalorder %s1979_s12, %s1586_s18  ;;  %p1594_p1 = scmp.lt.s32.totalorder %s1592_s20, %s1586_s18 }
  0x7a   : > { %739 = vperm.xlu1 %1555, %v728_v5   ;;  %734 = vperm.xlu0 %1554, %v727_v6   ;;  %p1588_p12 = pnand %p1587_p11, %p1752_p5  ;;  %p1595_p2 = por %p1594_p1, %p1593_p0 }
  0x7c   : > { %p1589_p13 = pneg %p1588_p12 }
  0x7e   : > { %744 = vperm.xlu1 %1555, %v729_v7   ;;  %749 = vperm.xlu0 %1554, %v730_v8   ;;  %p1596_p3 = pnand %p1595_p2, %p1589_p13 }
  0x82   : > { %754 = vperm.xlu1 %1555, %v731_v9  }
  0x8c   : > { %v541_v10 = vpop.permute.xlu1 %540  ;;  %v397_v11 = vpop.permute.xlu0 %396 }
  0x90   : > { %v543_v13 = vpop.permute.xlu1 %542  ;;  %v399_v14 = vpop.permute.xlu0 %398 }
  0x91   : > { %v401_v15 = vsel %vm400_vm1, %v397_v11, %v399_v14  ;;  %v545_v16 = vsel %vm544_vm2, %v541_v10, %v543_v13  ;;  %vm346_vm1 = vcmask 1006592   ;;  %vm634_vm2 = vcmask 875520   ;;  %v955_v13 = vld [vmem:[%s2022_s3] sm:$0xff]  ;;  %v956_v14 = vld [vmem:[%s2022_s3 + $0x8] sm:$0xff] }
  0x92   : > { %1336 = vmatprep.subr.bf16.mxu0 %v401_v15  ;;  %875 = vmatpush1.bf16.msra.mxu1 %v545_v16  ;;  %v1560_v16 = vld [vmem:[%s2020_s1] ss:$16 sps:$4 sm:$0xff]  }
  0x93   : > { %1337 = vmatpush3.bf16.msra.mxu0 %v1559_v12  ;;  %876 = vmatprep.subr.bf16.mxu1 %v1650_v0 }
  0x94   : > { %v417_v17 = vpop.permute.xlu1 %416  ;;  %v415_v18 = vpop.permute.xlu0 %414 }
  0x95   : > { %v419_v19 = vsel %vm418_vm3, %v415_v18, %v417_v17  ;;  %vm508_vm3 = vcmask 932864   ;;  %v1563_v17 = vld [vmem:[%s2020_s1 + $0x24] ss:$16 sps:$4 sm:$0xff]   ;;  %v1675_v18 = vmov 0.0|0.0  }
  0x96   : > { %1338 = vmatprep.subr.bf16.mxu0 %v419_v19  ;;  %v1458_v19 = vpack.c.bf16 %v956_v14, %v955_v13 }
  0x98   : > { %v273_v20 = vpop.permute.xlu1 %272  ;;  %v271_v21 = vpop.permute.xlu0 %270 }
  0x99   : > { %v275_v22 = vsel %vm274_vm4, %v271_v21, %v273_v20  ;;  %vm364_vm4 = vcmask 998400  }
  0x9a   : > { %1339 = vmatpush3.bf16.msra.mxu0 %v275_v22 }
  0x9c   : > { %v561_v23 = vpop.permute.xlu1 %560  ;;  %v559_v24 = vpop.permute.xlu0 %558 }
  0x9d   : > { %v563_v25 = vsel %vm562_vm5, %v559_v24, %v561_v23  ;;  %vm652_vm5 = vcmask 867328   ;;  %v700_v23 = vld [vmem:[%s2020_s1 + $0x40] sm:$0xff] }
  0x9e   : > { %877 = vmatpush1.bf16.msra.mxu1 %v563_v25 }
  0x9f   : > { %878 = vmatprep.subr.bf16.mxu1 %v1650_v0 }
  0xa0   : > { %v435_v26 = vpop.permute.xlu1 %434  ;;  %v433_v27 = vpop.permute.xlu0 %432 }
  0xa1   : > { %v437_v28 = vsel %vm436_vm6, %v433_v27, %v435_v26  ;;  %vm526_vm6 = vcmask 924672   ;;  %v1565_v27 = vld [vmem:[%s2020_s1 + $0x8] ss:$16 sps:$4 sm:$0xff]  }
  0xa2   : > { %1340 = vmatprep.subr.bf16.mxu0 %v437_v28  ;;  %v1568_v28 = vld [vmem:[%s2020_s1 + $0x20] ss:$16 sps:$4 sm:$0xff]  }
  0xa4   : > { %v291_v29 = vpop.permute.xlu1 %290  ;;  %v289_v30 = vpop.permute.xlu0 %288 }
  0xa5   : > { %v293_v31 = vsel %vm292_vm7, %v289_v30, %v291_v29  ;;  %vm382_vm7 = vcmask 990208   ;;  %v1570_v29 = vld [vmem:[%s2020_s1 + $0x2c] ss:$16 sps:$4 sm:$0xff]  }
  0xa6   : > { %1341 = vmatpush3.bf16.msra.mxu0 %v293_v31  ;;  %v701_v30 = vld [vmem:[%s2020_s1 + $0x48] sm:$0xff]  ;;  %v1317_v31 = vcombine.low %v700_v23, %v700_v23 }
  0xa8   : > { %v579_v32 = vpop.permute.xlu1 %578  ;;  %v577_v33 = vpop.permute.xlu0 %576 }
  0xa9   : > { %v581_v34 = vsel %vm580_vm8, %v577_v33, %v579_v32  ;;  %vm670_vm8 = vcmask 859136   ;;  %v1573_v32 = vld [vmem:[%s2020_s1 + $0x28] ss:$16 sps:$4 sm:$0xff]   ;;  %v1320_v33 = vcombine.high %v701_v30, %v701_v30 }
  0xaa   : > { %879 = vmatpush1.bf16.msra.mxu1 %v581_v34  ;;  %v1319_v34 = vcombine.low %v701_v30, %v701_v30 }
  0xab   : > { %880 = vmatprep.subr.bf16.mxu1 %v1650_v0 }
  0xac   : > { %v453_v35 = vpop.permute.xlu1 %452  ;;  %v451_v36 = vpop.permute.xlu0 %450 }
  0xad   : > { %v455_v37 = vsel %vm454_vm9, %v451_v36, %v453_v35  ;;  %vm688_vm9 = vcmask 850944   ;;  %v957_v35 = vld [vmem:[%s2022_s3 + $0x10] sm:$0xff]  ;;  %v958_v36 = vld [vmem:[%s2022_s3 + $0x18] sm:$0xff] }
  0xae   : > { %1342 = vmatprep.subr.bf16.mxu0 %v455_v37  ;;  %v1461_v37 = vpack.c.bf16 %v958_v36, %v957_v35 }
  0xb0   : > { %v309_v38 = vpop.permute.xlu1 %308  ;;  %v307_v39 = vpop.permute.xlu0 %306 }
  0xb1   : > { %v311_v40 = vsel %vm310_vm10, %v307_v39, %v309_v38  ;;  %v959_v38 = vld [vmem:[%s2022_s3 + $0x20] sm:$0xff]  ;;  %v960_v39 = vld [vmem:[%s2022_s3 + $0x28] sm:$0xff] }
  0xb2   : > { %1343 = vmatpush3.bf16.msra.mxu0 %v311_v40  ;;  %v1464_v40 = vpack.c.bf16 %v960_v39, %v959_v38 }
  0xb4   : > { %v597_v41 = vpop.permute.xlu1 %596  ;;  %v595_v42 = vpop.permute.xlu0 %594 }
  0xb5   : > { %v599_v43 = vsel %vm598_vm11, %v595_v42, %v597_v41  ;;  %v961_v41 = vld [vmem:[%s2022_s3 + $0x30] sm:$0xff]  ;;  %v962_v42 = vld [vmem:[%s2022_s3 + $0x38] sm:$0xff] }
  0xb6   : > { %881 = vmatpush1.bf16.msra.mxu1 %v599_v43  ;;  %v1467_v43 = vpack.c.bf16 %v962_v42, %v961_v41 }
  0xb7   : > { %882 = vmatprep.subr.bf16.mxu1 %v1650_v0 }
  0xb8   : > { %v471_v44 = vpop.permute.xlu1 %470  ;;  %v469_v45 = vpop.permute.xlu0 %468 }
  0xb9   : > { %v473_v46 = vsel %vm472_vm12, %v469_v45, %v471_v44  ;;  %v963_v44 = vld [vmem:[%s2022_s3 + $0x40] sm:$0xff]  ;;  %v964_v45 = vld [vmem:[%s2022_s3 + $0x48] sm:$0xff] }
  0xba   : > { %1344 = vmatprep.subr.bf16.mxu0 %v473_v46  ;;  %v1470_v46 = vpack.c.bf16 %v964_v45, %v963_v44 }
  0xbc   : > { %v327_v47 = vpop.permute.xlu1 %326  ;;  %v325_v48 = vpop.permute.xlu0 %324 }
  0xbd   : > { %v329_v49 = vsel %vm328_vm13, %v325_v48, %v327_v47  ;;  %v965_v47 = vld [vmem:[%s2022_s3 + $0x50] sm:$0xff]  ;;  %v966_v48 = vld [vmem:[%s2022_s3 + $0x58] sm:$0xff] }
  0xbe   : > { %1345 = vmatpush3.bf16.msra.mxu0 %v329_v49  ;;  %v1473_v49 = vpack.c.bf16 %v966_v48, %v965_v47 }
  0xc0   : > { %v615_v50 = vpop.permute.xlu1 %614  ;;  %v613_v51 = vpop.permute.xlu0 %612 }
  0xc1   : > { %v617_v52 = vsel %vm616_vm14, %v613_v51, %v615_v50  ;;  %v967_v50 = vld [vmem:[%s2022_s3 + $0x60] sm:$0xff]  ;;  %v968_v51 = vld [vmem:[%s2022_s3 + $0x68] sm:$0xff] }
  0xc2   : > { %883 = vmatpush1.bf16.msra.mxu1 %v617_v52  ;;  %v1476_v52 = vpack.c.bf16 %v968_v51, %v967_v50 }
  0xc3   : > { %884 = vmatprep.subr.bf16.mxu1 %v1650_v0 }
  0xc4   : > { %v489_v53 = vpop.permute.xlu1 %488  ;;  %v487_v54 = vpop.permute.xlu0 %486 }
  0xc5   : > { %v491_v55 = vsel %vm490_vm15, %v487_v54, %v489_v53  ;;  %v969_v53 = vld [vmem:[%s2022_s3 + $0x70] sm:$0xff]  ;;  %v970_v54 = vld [vmem:[%s2022_s3 + $0x78] sm:$0xff]  ;;  %vm1105_vm15 = vcmask 326656  }
  0xc6   : > { %1346 = vmatprep.subr.bf16.mxu0 %v491_v55  ;;  %v1479_v55 = vpack.c.bf16 %v970_v54, %v969_v53 }
  0xc8   : > { %v345_v56 = vpop.permute.xlu1 %344  ;;  %v343_v57 = vpop.permute.xlu0 %342 }
  0xc9   : > { %v347_v58 = vsel %vm346_vm1, %v343_v57, %v345_v56  ;;  %v1677_v56 = vmov 0.0  }
  0xca   : > { %1347 = vmatpush3.bf16.msra.mxu0 %v347_v58 }
  0xcc   : > { %v633_v59 = vpop.permute.xlu1 %632  ;;  %v631_v60 = vpop.permute.xlu0 %630 }
  0xcd   : > { %v635_v61 = vsel %vm634_vm2, %v631_v60, %v633_v59 }
  0xce   : > { %885 = vmatpush1.bf16.msra.mxu1 %v635_v61 }
  0xcf   : > { %886 = vmatprep.subr.bf16.mxu1 %v1650_v0 }
  0xd0   : > { %v507_v62 = vpop.permute.xlu1 %506  ;;  %v505_v63 = vpop.permute.xlu0 %504 }
  0xd1   : > { %v509_v1 = vsel %vm508_vm3, %v505_v63, %v507_v62 }
  0xd2   : > { %1348 = vmatprep.subr.bf16.mxu0 %v509_v1 }
  0xd4   : > { %v363_v2 = vpop.permute.xlu1 %362  ;;  %v361_v3 = vpop.permute.xlu0 %360 }
  0xd5   : > { %v365_v4 = vsel %vm364_vm4, %v361_v3, %v363_v2 }
  0xd6   : > { %1349 = vmatpush3.bf16.msra.mxu0 %v365_v4 }
  0xd8   : > { %v651_v5 = vpop.permute.xlu1 %650  ;;  %v649_v6 = vpop.permute.xlu0 %648 }
  0xd9   : > { %v653_v7 = vsel %vm652_vm5, %v649_v6, %v651_v5 }
  0xda   : > { %887 = vmatpush1.bf16.msra.mxu1 %v653_v7 }
  0xdb   : > { %888 = vmatprep.subr.bf16.mxu1 %v1650_v0 }
  0xdc   : > { %v525_v8 = vpop.permute.xlu1 %524  ;;  %v523_v9 = vpop.permute.xlu0 %522 }
  0xdd   : > { %v527_v10 = vsel %vm526_vm6, %v523_v9, %v525_v8 }
  0xde   : > { %1350 = vmatprep.subr.bf16.mxu0 %v527_v10 }
  0xe0   : > { %v381_v11 = vpop.permute.xlu1 %380  ;;  %v379_v12 = vpop.permute.xlu0 %378 }
  0xe1   : > { %v383_v15 = vsel %vm382_vm7, %v379_v12, %v381_v11 }
  0xe2   : > { %1351 = vmatpush3.bf16.msra.mxu0 %v383_v15 }
  0xe3   : > { %1457 = vmatprep.subr.bf16.mxu0 %v1675_v18 }
  0xe4   : > { %v669_v20 = vpop.permute.xlu1 %668  ;;  %v667_v21 = vpop.permute.xlu0 %666 }
  0xe5   : > { %851 = vmatmul.mubr.bf16.vlgmr.msra.gmra.mrb[0].mxu0 %v1560_v16  ;;  %v671_v22 = vsel %vm670_vm8, %v667_v21, %v669_v20 }
  0xe6   : > { %889 = vmatpush1.bf16.msra.mxu1 %v671_v22  ;;  %858 = vmatprep.mubr.bf16.mxu0 %v1563_v17 }
  0xe7   : > { %890 = vmatprep.subr.bf16.mxu1 %v1650_v0  ;;  %1459 = vmatpush3.bf16.msra.mxu0 %v1458_v19  ;;  %v1318_v0 = vcombine.high %v700_v23, %v700_v23 }
  0xe8   : > { %v687_v24 = vpop.permute.xlu1 %686  ;;  %v685_v25 = vpop.permute.xlu0 %684  ;;  %1460 = vmatprep.subr.bf16.mxu0 %v1675_v18 }
  0xe9   : > { %v689_v26 = vsel %vm688_vm9, %v685_v25, %v687_v24 }
  0xea   : > { %891 = vmatpush1.bf16.msra.mxu1 %v689_v26 }
  0xeb   : > { %1481 = vmatprep.subr.bf16.mxu1 %v1675_v18  ;;  %1462 = vmatpush3.bf16.msra.mxu0 %v1461_v37 }
  0xec   : > { %1463 = vmatprep.subr.bf16.mxu0 %v1675_v18 }
  0xed   : > { %859 = vmatmul.mubr.bf16.gmra.mrb[4].mxu0 %v1568_v28  ;;  %907 = vmatmul.mubr.bf16.vlgmr.msra.gmra.mrb[0].mxu1 %v1565_v27 }
  0xee   : > { %866 = vmatprep.mubr.bf16.mxu0 %v1318_v0  ;;  %1322 = vmatprep.mubr.msk.bf16.mxu1 %vm808_vm0, %v1570_v29 }
  0xef   : > { %1465 = vmatpush3.bf16.msra.mxu0 %v1464_v40 }
  0xf0   : > { %1466 = vmatprep.subr.bf16.mxu0 %v1675_v18 }
  0xf3   : > { %1468 = vmatpush3.bf16.msra.mxu0 %v1467_v43 }
  0xf4   : > { %1469 = vmatprep.subr.bf16.mxu0 %v1675_v18 }
  0xf5   : > { %867 = vmatmul.mubr.bf16.gmra.mrb[8].mxu0 %v1317_v31  ;;  %915 = vmatmul.mubr.bf16.gmra.mrb[4].mxu1 %v1573_v32 }
  0xf6   : > { %1323 = vmatprep.mubr.msk.bf16.mxu1 %vm808_vm0, %v1320_v33  ;;  %vm1676_vm0 = vmmov 0  }
  0xf7   : > { %1471 = vmatpush3.bf16.msra.mxu0 %v1470_v46  ;;  %1429 = vmatprep.mubr.msk.f32.mxu0 %vm1676_vm0, %v1677_v56 }
  0xf8   : > { %1472 = vmatprep.subr.bf16.mxu0 %v1675_v18 }
  0xf9   : > { %v735_v62 = vpop.permute.xlu0 %734  ;;  %v740_v2 = vpop.permute.xlu1 %739 }
  0xfb   : > { %1474 = vmatpush3.bf16.msra.mxu0 %v1473_v49 }
  0xfc   : > { %1475 = vmatprep.subr.bf16.mxu0 %v1675_v18 }
  0xfd   : > { %923 = vmatmul.mubr.bf16.gmra.mrb[8].mxu1 %v1319_v34  ;;  %v745_v19 = vpop.permute.xlu1 %744  ;;  %v750_v20 = vpop.permute.xlu0 %749 }
  0xfe   : > { %1454 = vmatprep.mubr.msk.f32.mxu1 %vm1676_vm0, %v1677_v56 }
  0xff   : > { %1477 = vmatpush3.bf16.msra.mxu0 %v1476_v52 }
 0x100   : > { %1478 = vmatprep.subr.bf16.mxu0 %v1675_v18 }
 0x101   : > { %v755_v35 = vpop.permute.xlu1 %754 }
 0x103   : > { %1480 = vmatpush3.bf16.msra.mxu0 %v1479_v55 }
 0x1b8   : > { %v1352_v57 = vpop.f32.mrb[0].mxu0 }
 0x1b9   : > { %v1353_v58 = vpop.f32.mrb[1].mxu0 }
 0x1ba   : > { %v1354_v59 = vadd.f32 %v1353_v58, %v1352_v57  ;;  %v1355_v60 = vpop.f32.mrb[2].mxu0 }
 0x1bb   : > { %v1356_v61 = vpop.f32.mrb[3].mxu0 }
 0x1bc   : > { %v1357_v63 = vadd.f32 %v1356_v61, %v1355_v60  ;;  %v853_v1 = vadd.f32 %v1354_v59, %v735_v62  ;;  %v1061_v59 = vld [vmem:[%s2023_s4] sm:$0xff]  ;;  %v1062_v60 = vld [vmem:[%s2023_s4 + $0x8] sm:$0xff]  ;;  %v1063_v61 = vld [vmem:[%s2023_s4 + $0x10] sm:$0xff] }
 0x1bd   : > { %v1482_v62 = vpack.c.bf16 %v1062_v60, %v1061_v59 }
 0x1be   : > { %v856_v8 = vadd.f32 %v1357_v63, %v740_v2  ;;  %v1064_v63 = vld [vmem:[%s2023_s4 + $0x18] sm:$0xff]  ;;  %v1065_v2 = vld [vmem:[%s2023_s4 + $0x20] sm:$0xff] }
 0x1bf   : > { %1483 = vmatpush3.bf16.msra.mxu1 %v1482_v62 }
 0x1c0   : > { %v1358_v3 = vpop.f32.mrb[4].mxu0  ;;  %v908_v4 = vpop.f32.mrb[0].mxu1  ;;  %1484 = vmatprep.subr.bf16.mxu1 %v1675_v18 }
 0x1c1   : > { %v909_v5 = vadd.f32 %v908_v4, %v853_v1  ;;  %v1359_v6 = vpop.f32.mrb[5].mxu0  ;;  %v910_v7 = vpop.f32.mrb[1].mxu1  ;;  %v1485_v1 = vpack.c.bf16 %v1064_v63, %v1063_v61 }
 0x1c2   : > { %v1360_v9 = vadd.f32 %v1359_v6, %v1358_v3  ;;  %v1361_v10 = vpop.f32.mrb[6].mxu0  ;;  %v911_v11 = vpop.f32.mrb[2].mxu1 }
 0x1c3   : > { %v935_v12 = vmul.f32 1.442695, %v909_v5  ;;  %v912_v13 = vadd.f32 %v911_v11, %v856_v8  ;;  %v1362_v14 = vpop.f32.mrb[7].mxu0  ;;  %v913_v15 = vpop.f32.mrb[3].mxu1  ;;  %vm930_vm10 = vcmp.gt.f32.partialorder %v909_v5, 0.0  ;;  %1486 = vmatpush3.bf16.msra.mxu1 %v1485_v1 }
 0x1c4   : > { %v1363_v16 = vadd.f32 %v1362_v14, %v1361_v10  ;;  %v861_v21 = vadd.f32 %v1360_v9, %v745_v19  ;;  %1452 = vmatprep.subr.mxu1 %v1677_v56 }
 0x1c5   : > { %1576 = vpow2.f32 %v935_v12  ;;  %v937_v17 = vmul.f32 1.442695, %v912_v13  ;;  %vm931_vm11 = vcmp.gt.f32.partialorder %v912_v13, 0.0  ;;  %v1329_v12 = vld [vmem:[%s2024_s5] ss:$0 sm:$0xff] }
 0x1c6   : > { %v864_v27 = vadd.f32 %v1363_v16, %v750_v20 }
 0x1c7   : > { %1578 = vpow2.f32 %v937_v17  ;;  %1453 = vmatpush3.msra.mxu1 %v1065_v2 }
 0x1c8   : > { %v1364_v22 = vpop.f32.mrb[8].mxu0  ;;  %v916_v23 = vpop.f32.mrb[4].mxu1 }
 0x1c9   : > { %v917_v24 = vadd.f32 %v916_v23, %v861_v21  ;;  %v1365_v25 = vpop.f32.mrb[9].mxu0  ;;  %v918_v26 = vpop.f32.mrb[5].mxu1 }
 0x1ca   : > { %v1366_v28 = vadd.f32 %v1365_v25, %v1364_v22  ;;  %v1367_v0 = vpop.f32.mrb[10].mxu0  ;;  %v919_v29 = vpop.f32.mrb[6].mxu1 }
 0x1cb   : > { %v939_v30 = vmul.f32 1.442695, %v917_v24  ;;  %v920_v31 = vadd.f32 %v919_v29, %v864_v27  ;;  %v1368_v32 = vpop.f32.mrb[11].mxu0  ;;  %v921_v33 = vpop.f32.mrb[7].mxu1  ;;  %vm932_vm12 = vcmp.gt.f32.partialorder %v917_v24, 0.0 }
 0x1cc   : > { %v869_v37 = vadd.f32 %v1366_v28, %v755_v35 }
 0x1cd   : > { %1580 = vpow2.f32 %v939_v30  ;;  %v941_v34 = vmul.f32 1.442695, %v920_v31  ;;  %vm933_vm13 = vcmp.gt.f32.partialorder %v920_v31, 0.0 }
 0x1cf   : > { %v1577_v36 = vpop.eup %1576  ;;  %1582 = vpow2.f32 %v941_v34 }
 0x1d0   : > { %v1324_v38 = vadd.f32 -1.0, %v1577_v36  ;;  %v924_v39 = vpop.f32.mrb[8].mxu1 }
 0x1d1   : > { %v1579_v40 = vpop.eup %1578  ;;  %v925_v41 = vadd.f32 %v924_v39, %v869_v37  ;;  %v926_v42 = vpop.f32.mrb[9].mxu1 }
 0x1d2   : > { %v950_v43 = vsel %vm930_vm10, %v909_v5, %v1324_v38  ;;  %v927_v44 = vpop.f32.mrb[10].mxu1  ;;  %v1325_v45 = vadd.f32 -1.0, %v1579_v40 }
 0x1d3   : > { %v943_v46 = vmul.f32 1.442695, %v925_v41  ;;  %v928_v47 = vpop.f32.mrb[11].mxu1  ;;  %1430 = vmatmul.mubr.f32.vlgmr.msra.gmra.mrb[12].mxu0 %v950_v43  ;;  %vm934_vm14 = vcmp.gt.f32.partialorder %v925_v41, 0.0 }
 0x1d4   : > { %1432 = vmatprep.mubr.msk.f32.mxu0 %vm1676_vm0, %v1677_v56  ;;  %v951_v48 = vsel %vm931_vm11, %v912_v13, %v1325_v45 }
 0x1d5   : > { %1584 = vpow2.f32 %v943_v46 }
 0x1d7   : > { %v1581_v49 = vpop.eup %1580  ;;  %1433 = vmatmul.mubr.f32.gmra.mrb[14].mxu0 %v951_v48 }
 0x1d8   : > { %1435 = vmatprep.mubr.msk.f32.mxu0 %vm1676_vm0, %v1677_v56  ;;  %v1326_v50 = vadd.f32 -1.0, %v1581_v49 }
 0x1d9   : > { %v1583_v51 = vpop.eup %1582 }
 0x1da   : > { %v952_v52 = vsel %vm932_vm12, %v917_v24, %v1326_v50  ;;  %v1327_v53 = vadd.f32 -1.0, %v1583_v51 }
 0x1db   : > { %1436 = vmatmul.mubr.f32.gmra.mrb[16].mxu0 %v952_v52 }
 0x1dc   : > { %1438 = vmatprep.mubr.msk.f32.mxu0 %vm1676_vm0, %v1677_v56  ;;  %v953_v54 = vsel %vm933_vm13, %v920_v31, %v1327_v53 }
 0x1df   : > { %v1585_v55 = vpop.eup %1584  ;;  %1439 = vmatmul.mubr.f32.gmra.mrb[18].mxu0 %v953_v54 }
 0x1e0   : > { %1441 = vmatprep.mubr.msk.f32.mxu0 %vm1676_vm0, %v1677_v56  ;;  %v1328_v57 = vadd.f32 -1.0, %v1585_v55 }
 0x1e2   : > { %v954_v58 = vsel %vm934_vm14, %v925_v41, %v1328_v57 }
 0x1e3   : > { %1442 = vmatmul.mubr.f32.gmra.mrb[20].mxu0 %v954_v58 }
 0x2a6   : > { %v1037_v3 = vpop.f32.mrb[12].mxu0 }
 0x2a7   : > { %1073 = vxpose.xlu0.b32.start [1/5] (short) (narrow) %v1037_v3, 8  ;;  %v1431_v4 = vpop.f32.mrb[13].mxu0 }
 0x2aa   : > { %v1042_v5 = vpop.f32.mrb[14].mxu0 }
 0x2ab   : > { %1074 = vxpose.xlu0.b32.cont [2/5] (short) (narrow) %v1042_v5, 8  ;;  %v1434_v6 = vpop.f32.mrb[15].mxu0 }
 0x2ae   : > { %v1047_v7 = vpop.f32.mrb[16].mxu0 }
 0x2af   : > { %1075 = vxpose.xlu0.b32.cont [3/5] (short) (narrow) %v1047_v7, 8  ;;  %v1437_v8 = vpop.f32.mrb[17].mxu0 }
 0x2b2   : > { %v1052_v18 = vpop.f32.mrb[18].mxu0 }
 0x2b3   : > { %1076 = vxpose.xlu0.b32.cont [4/5] (short) (narrow) %v1052_v18, 8  ;;  %v1440_v9 = vpop.f32.mrb[19].mxu0 }
 0x2b6   : > { %v1057_v56 = vpop.f32.mrb[20].mxu0 }
 0x2b7   : > { %1077 = vxpose.xlu0.b32.end [5/5] (short) (narrow) %v1057_v56, 8  ;;  %v1443_v10 = vpop.f32.mrb[21].mxu0 }
 0x327   : > { %v1089_v11 = vpop.trf.xlu0 }
 0x328   : > { %1455 = vmatmul.mubr.msk.f32.vlgmr.msra.gmra.mrb[12].mxu1 %vm1105_vm15, %v1089_v11 }
 0x3fb   : > { %v1175_v13 = vpop.f32.mrb[12].mxu1 }
 0x3fc   : > { %v1176_v14 = vadd.f32 %v1329_v12, %v1175_v13  ;;  %v1456_v15 = vpop.f32.mrb[13].mxu1 }
 0x3fe   : > { %1179 = vst [vmem:[%s244_s11] sm:$0xf] %v1176_v14 }
 0x3ff   : > { %1599 = shalt.err (!%p1596_p3)
}
 0x400   : > { %s1600_s26 = scalar_lea.hbm %s1977_s16, 64  ;;  %s1604_s13 = scalar_lea.hbm %s2025_s6, 128 }
 0x401   : > { %p1601_p4 = scmp.ne.s32.totalorder %s1977_s16, %s1600_s26  ;;  %p1605_p9 = scmp.lt.u32.totalorder %s1977_s16, %s2025_s6 }
 0x402   : > { %p1606_p10 = scmp.lt.u32.totalorder %s1604_s13, %s1600_s26  ;;  %p1608_p12 = scmp.lt.u32.totalorder %s1600_s26, %s1977_s16 }
 0x403   : > { %p1602_p7 = pnand %p1601_p4, %p1752_p5 }
 0x404   : > { %p1607_p11 = por %p1606_p10, %p1605_p9 }
 0x405   : > { %p1603_p8 = pneg %p1602_p7 }
 0x406   : > { %p1609_p13 = por %p1608_p12, %p1607_p11 }
 0x408   : > { %p1610_p0 = pnand %p1609_p13, %p1603_p8 }
 0x40a   : > { %1613 = shalt.err (!%p1610_p0)
}
 0x40b   : > { %1487 = dma.vmem_to_hbm [thread:$0]  (%p1752_p5), %s1979_s12, 64, %s1977_s16, %s1181_s17  }
 0x40c PF: > { %p1493_p1 = scmp.ge.s32.totalorder %s1648_s24, 2  ;;  %s1206_s11 = sand.u32 1, %s1636_s21  }
 0x40d   : > { %s1207_s14 = scalar_lea.sflag [#allocation4], %s1206_s11 }
 0x40e   : > { %p1490_p2 = pnand %p1493_p1, %p1756_p6 }
 0x410   : > { %1631 = dma.done.wait (!%p1490_p2), %s1207_s14, 64  }
 0x411   : > { %1633 = vsyncadd (!%p1490_p2), %s1207_s14, 4294967232  ;;  %p16_p3 = scmp.ge.s32.totalorder %s1739_s27, 4   ;;  %s2028_s21 = smov %s1640_s22 }
 0x412   : > { %s2029_s22 = smov %s1644_s23  ;;  %s2030_s23 = smov %s1750_s30 }
 0x413   : > { %s2031_s24 = smov %s1739_s27  ;;  %18 = sbr.rel (!%p16_p3) target bundleno = 3 (0x3), region = 79 }
 0x41a   :  { %1212 = vsyncpa [#allocation4], 1 }
 0x41b   :  { %1214 = vsyncpa [#allocation4 + $0x1], 1 }

</bundles_post_ra>
